<compile_context>
chip_gen: v6e
topology: v6e:2x2x1
jax: 0.10.0
libtpu: 0.0.40
codegen_flags: <defaults>
</compile_context>

<pallas_src>
import jax
import jax.numpy as jnp
from jax.experimental import pallas as pl
from jax.experimental.pallas import tpu as pltpu


def class_embedding_kernel(c_ref, w_ref, b_ref, o_ref):
    # c_ref: (tB, 1), w_ref: (1, tD) f32, b_ref: (1, tD) f32, o_ref: (tB, tD)
    c = c_ref[...].astype(jnp.float32)          # (tB, 1)
    w = w_ref[...]                               # (1, tD)
    b = b_ref[...]                               # (1, tD)
    o_ref[...] = (c * w + b).astype(o_ref.dtype)  # broadcast FMA -> (tB, tD)


def _round_up(x, m):
    return ((x + m - 1) // m) * m


def _scratch_budget_bytes():
    """Generation-aware target for double-buffered tile scratch: stay under
    v5e's 16 MiB default scoped-VMEM; allow larger tiles on v6e/v7x."""
    try:
        kind = jax.devices()[0].device_kind.lower()
    except Exception:
        return 12 << 20
    if "v2" in kind or "v3" in kind or "v4" in kind or "v5" in kind:
        return 12 << 20
    return 24 << 20  # v6e / v7x


def _choose_tb(B, tD, c_itemsize, out_itemsize, budget_bytes):
    """Batch tile: whole batch when B <= 8, else a multiple of 8 sized so the
    double-buffered output and c tiles fit in `budget_bytes` (<= 8192 rows)."""
    if B <= 8:
        return B
    tD_lanes = _round_up(tD, 128)
    # Per-row VMEM cost: 2x-buffered out tile + 2x-buffered c tile (the (tB,1)
    # c block is lane-padded to 128 lanes in VMEM).
    per_row = 2 * (tD_lanes * out_itemsize + 128 * c_itemsize)
    cap = max(8, (budget_bytes // per_row) // 8 * 8)
    tb = min(_round_up(B, 8), cap, 8192)
    return max(8, (tb // 8) * 8)


def class_embedding(c, weight, bias):
    """c: (B, 1); weight: (dim, 1); bias: (dim,) -> (B, dim) = c @ W^T + b."""
    B = c.shape[0]
    dim = weight.shape[0]
    out_dtype = c.dtype

    # Weight / bias as single float32 rows (no precision round-trip; tiny).
    w_row = weight.reshape(1, dim).astype(jnp.float32)
    b_row = bias.reshape(1, dim).astype(jnp.float32)

    # Feature tiling: lane-aligned dims get <=512-lane tiles (gives >1 grid
    # step for v7x megacore even when B fits one batch tile); otherwise a
    # single full-dim block (block dim == array dim is legal) with masked
    # tail stores — cheaper than padding + slicing an extra HBM pass.
    if dim % 128 == 0:
        tD = min(dim, 512)
    else:
        tD = dim
    nD = pl.cdiv(dim, tD)

    c_item = jnp.dtype(c.dtype).itemsize
    o_item = jnp.dtype(out_dtype).itemsize
    tB = _choose_tb(B, tD, c_item, o_item, _scratch_budget_bytes())
    nB = pl.cdiv(B, tB)

    # Explicit scoped-VMEM sizing: 2x-buffered out + c tiles, resident w/b
    # rows (sublane-padded to 8), plus headroom for compiler scratch.
    tD_lanes = _round_up(tD, 128)
    vmem_bytes = (2 * tB * tD_lanes * o_item          # out double-buffer
                  + 2 * tB * 128 * c_item             # c double-buffer
                  + 2 * 2 * 8 * tD_lanes * 4          # w/b double-buffer (f32)
                  + (4 << 20))                        # headroom
    vmem_bytes = int(min(max(vmem_bytes, 16 << 20), 100 << 20))

    return pl.pallas_call(
        class_embedding_kernel,
        out_shape=jax.ShapeDtypeStruct((B, dim), out_dtype),
        grid_spec=pl.GridSpec(
            grid=(nB, nD),
            in_specs=[
                # c: one (tB, 1) tile per batch step.
                pl.BlockSpec((tB, 1), lambda i, j: (i, 0)),
                # weight / bias rows: resident across batch steps.
                pl.BlockSpec((1, tD), lambda i, j: (0, j)),
                pl.BlockSpec((1, tD), lambda i, j: (0, j)),
            ],
            out_specs=pl.BlockSpec((tB, tD), lambda i, j: (i, j)),
        ),
        compiler_params=pltpu.CompilerParams(
            dimension_semantics=("parallel", "parallel"),
            vmem_limit_bytes=vmem_bytes,
        ),
    )(c, w_row, b_row)


if __name__ == "__main__":
    key = jax.random.PRNGKey(0)
    k_c, k_w, k_b = jax.random.split(key, 3)

    B, dim = 8, 32

    # Deterministic "nn.Linear(1, dim)" init: kaiming-uniform with fan_in=1
    # gives bound 1/sqrt(1) = 1 for both weight and bias.
    weight = jax.random.uniform(k_w, (dim, 1), jnp.float32, -1.0, 1.0)
    bias = jax.random.uniform(k_b, (dim,), jnp.float32, -1.0, 1.0)

    # Class labels as a float column vector, like the legacy module expects.
    c = jax.random.uniform(k_c, (B, 1), jnp.float32, 0.0, 10.0)

    out = class_embedding(c, weight, bias)
    out = jax.block_until_ready(out)

    # Reference check against plain JAX linear.
    ref = c @ weight.T + bias
    assert out.shape == (B, dim)
    assert jnp.allclose(out, ref, atol=1e-5, rtol=1e-5)

    print("KERNEL_OK")
</pallas_src>

<mosaic_0001>
module attributes {stable_mosaic.version = 11 : i64} {
  func.func @class_embedding_kernel(%arg0: i32, %arg1: i32, %arg2: memref<8x1xf32, #tpu.memory_space<vmem>>, %arg3: memref<1x32xf32, #tpu.memory_space<vmem>>, %arg4: memref<1x32xf32, #tpu.memory_space<vmem>>, %arg5: memref<8x32xf32, #tpu.memory_space<vmem>>) attributes {dimension_semantics = [#tpu.dimension_semantics<parallel>, #tpu.dimension_semantics<parallel>], iteration_bounds = array<i64: 1, 1>, scalar_prefetch = 0 : i64, scratch_operands = 0 : i64, tpu.core_type = #tpu.core_type<tc>, window_params = [{transform_indices = @transform_0, window_bounds = array<i64: 8, 1>}, {transform_indices = @transform_1, window_bounds = array<i64: 1, 32>}, {transform_indices = @transform_2, window_bounds = array<i64: 1, 32>}, {transform_indices = @transform_3, window_bounds = array<i64: 8, 32>}]} {
    %c0 = arith.constant 0 : index
    %c0_0 = arith.constant 0 : index
    %0 = vector.load %arg2[%c0, %c0_0] : memref<8x1xf32, #tpu.memory_space<vmem>>, vector<8x1xf32>
    %c0_1 = arith.constant 0 : index
    %c0_2 = arith.constant 0 : index
    %1 = vector.load %arg3[%c0_1, %c0_2] : memref<1x32xf32, #tpu.memory_space<vmem>>, vector<1x32xf32>
    %c0_3 = arith.constant 0 : index
    %c0_4 = arith.constant 0 : index
    %2 = vector.load %arg4[%c0_3, %c0_4] : memref<1x32xf32, #tpu.memory_space<vmem>>, vector<1x32xf32>
    %3 = vector.broadcast %0 : vector<8x1xf32> to vector<8x32xf32>
    %4 = vector.broadcast %1 : vector<1x32xf32> to vector<8x32xf32>
    %5 = arith.mulf %3, %4 : vector<8x32xf32>
    %6 = vector.broadcast %2 : vector<1x32xf32> to vector<8x32xf32>
    %7 = arith.addf %5, %6 : vector<8x32xf32>
    %c0_5 = arith.constant 0 : index
    %c0_6 = arith.constant 0 : index
    %8 = vector.load %arg5[%c0_5, %c0_6] : memref<8x32xf32, #tpu.memory_space<vmem>>, vector<8x32xf32>
    tpu.vector_store %arg5[%c0_5, %c0_6], %7 {strides = array<i32>} : memref<8x32xf32, #tpu.memory_space<vmem>>, vector<8x32xf32>,
    return
  }
  func.func @transform_0(%arg0: i32, %arg1: i32) -> (i32, i32) {
    %c0_i32 = arith.constant 0 : i32
    %c0_i32_0 = arith.constant 0 : i32
    return %arg0, %c0_i32 : i32, i32
  }
  func.func @transform_1(%arg0: i32, %arg1: i32) -> (i32, i32) {
    %c0_i32 = arith.constant 0 : i32
    %c0_i32_0 = arith.constant 0 : i32
    return %c0_i32, %arg1 : i32, i32
  }
  func.func @transform_2(%arg0: i32, %arg1: i32) -> (i32, i32) {
    %c0_i32 = arith.constant 0 : i32
    %c0_i32_0 = arith.constant 0 : i32
    return %c0_i32, %arg1 : i32, i32
  }
  func.func @transform_3(%arg0: i32, %arg1: i32) -> (i32, i32) {
    %c0_i32 = arith.constant 0 : i32
    return %arg0, %arg1 : i32, i32
  }
}

</mosaic_0001>

<bundles_post_ra>
// kernel: tpu_custom_call.1
= control target key start
LH: loop header
LB: loop body
LE: loop exit
PB: predicated region body
PF: predicated region fallthrough
CT: control target
= control target key end

     0   :  { %v80_v1 = vmov 0   ;;  %s114_s0 = inlined_call_operand.vmem [shape: f32[8,1], index: 0, kind: input, shape index: {}]   ;;  %s115_s1 = inlined_call_operand.vmem [shape: f32[1,32], index: 1, kind: input, shape index: {}]   ;;  %s116_s2 = inlined_call_operand.vmem [shape: f32[1,32], index: 2, kind: input, shape index: {}]   ;;  %s117_s3 = inlined_call_operand.hbm [shape: f32[8,32], index: 3, kind: output, shape index: {}]  }
   0x1   :  { %v15_v0 = vld [vmem:[%s114_s0] sm:$0xff]  ;;  %57 = vset.pattern.permute.xlu0 %v80_v1 }
   0x2   :  { %8 = vsyncpa [#allocation3], 0  ;;  %20 = vperm.xlu0 %57, %v15_v0   ;;  %v53_v2 = vld [vmem:[%s115_s1] ss:$0 sm:$0xff]  ;;  %s81_s18 = smov [#allocation2]   ;;  %vm37_vm0 = vcmask 261120  }
   0x3   :  { %v54_v3 = vld [vmem:[%s116_s2] ss:$0 sm:$0xff]  ;;  %s45_s19 = sshll.u32 %s81_s18, 4  ;;  %s46_s19 = int_to_ptr.vmem [resolvable:$true] %s45_s19 }
   0x4   :  { %s58_s0 = scalar_lea.vmem %s46_s19, 128  ;;  %p63_p1 = scmp.lt.s32.totalorder %s46_s19, %s46_s19 }
   0x5   :  { %p59_p0 = scmp.ne.s32.totalorder %s46_s19, %s58_s0  ;;  %p64_p2 = scmp.lt.s32.totalorder %s58_s0, %s58_s0 }
   0x7   :  { %p65_p3 = por %p64_p2, %p63_p1 }
   0x9   :  { %p66_p4 = pnand %p65_p3, %p59_p0 }
  0x7d   :  { %v21_v4 = vpop.permute.xlu0 %20 }
  0x7e   :  { %v29_v5 = vmul.f32 %v53_v2, %v21_v4 }
  0x80   :  { %v36_v6 = vadd.f32 %v54_v3, %v29_v5 }
  0x82   :  { %38 = vst.msk [vmem:[#allocation2] sm:$0xff] %vm37_vm0, %v36_v6 }
  0x83   :  { %69 = shalt.err (!%p66_p4)
}
  0x84   :  { %48 = dma.vmem_to_hbm [thread:$0]  %s46_s19, 128, %s117_s3, [#allocation3]  }
  0x85   :  { %78 = dma.done.wait [#allocation3], 128  }
  0x86   :  { %79 = vsyncadd [#allocation3], 4294967168 }
  0x87   :  { %52 = vsyncpa [#allocation3], 1 }

</bundles_post_ra>
